<compile_context>
chip_gen: v5e
topology: v5e:2x2
jax: 0.10.0
libtpu: 0.0.40
codegen_flags: <defaults>
</compile_context>

<pallas_src>
import functools

import jax
import jax.numpy as jnp
from jax import lax
from jax.experimental import pallas as pl
from jax.experimental.pallas import tpu as pltpu


def _itemsize(dtype):
    return jnp.dtype(dtype).itemsize


def _sublane(dtype):
    # Sublane quantum of the packed dtype: 8 (4B), 16 (2B), 32 (1B).
    return max(8, 32 // max(1, _itemsize(dtype)))


def _pick_tile(T, max_tile, out_dtype):
    """Largest tile <= max_tile that divides T and is sublane-aligned."""
    if T <= max_tile:
        return T  # full-dim blocks are always layout-legal
    sub = _sublane(out_dtype)
    for tt in range(max_tile, sub - 1, -1):
        if tt % sub == 0 and T % tt == 0:
            return tt
    # TODO(synk): no aligned divisor of T <= max_tile; fall back to a single
    # whole-sequence tile (VMEM-heavy for very long T).
    return T


def _vmem_capacity_bytes():
    try:
        return int(pltpu.get_tpu_info().vmem_capacity_bytes)
    except Exception:
        return 64 << 20  # conservative default (v7x per-core VMEM)


def _stem_kernel(idx_ref, tok_ref, pos_ref, *rest, tile_t, seq_len,
                 dropout_p, use_dropout, resident):
    # idx_ref : SMEM scalar-prefetch, flat (B*T,) int32 token ids
    # tok_ref : (vocab, E) table; full VMEM operand (resident) or HBM (pl.ANY)
    # pos_ref : (tile_t, E) positional rows for this tile (VMEM, auto-pipelined)
    # bits_ref: (tile_t, E) uint32 dropout bits (training only)
    # out_ref : (tile_t, E) output tile (leading batch dim squeezed)
    # buf     : VMEM (tile_t, E) gather scratch
    # sem     : single shared DMA semaphore (HBM-gather path only)
    if use_dropout:
        bits_ref, out_ref, buf = rest[0], rest[1], rest[2]
        dma_scratch = rest[3:]
    else:
        bits_ref = None
        out_ref, buf = rest[0], rest[1]
        dma_scratch = rest[2:]

    i = pl.program_id(0)                # tile index along T
    b = pl.program_id(1)                # batch index
    base = b * seq_len + i * tile_t     # flat offset into the prefetched ids
    unroll = max(1, min(8, tile_t))

    if resident:
        # Table is fully VMEM-resident: gather rows with dynamic-slice reads,
        # no DMA descriptors at all.
        def gather_row(r, carry):
            tok_id = idx_ref[base + r]
            buf[pl.ds(r, 1), :] = tok_ref[pl.ds(tok_id, 1), :]
            return carry

        lax.fori_loop(0, tile_t, gather_row, 0, unroll=unroll)
    else:
        # Table stays in HBM: per-row async copies, all in flight at once,
        # signalling one shared DMA semaphore.
        sem = dma_scratch[0]

        def issue_row(r, carry):
            tok_id = idx_ref[base + r]
            pltpu.make_async_copy(
                tok_ref.at[pl.ds(tok_id, 1), :],
                buf.at[pl.ds(r, 1), :],
                sem,
            ).start()
            return carry

        lax.fori_loop(0, tile_t, issue_row, 0, unroll=unroll)

        def wait_row(r, carry):
            # Dummy source of identical (1, E) size -> byte counts match.
            pltpu.make_async_copy(
                tok_ref.at[pl.ds(0, 1), :],
                buf.at[pl.ds(r, 1), :],
                sem,
            ).wait()
            return carry

        lax.fori_loop(0, tile_t, wait_row, 0, unroll=unroll)
        # TODO(synk): cross-grid-step prefetch (double-buffered buf) would hide
        # the gather latency behind the previous tile's compute.

    # Add positional rows in the table's native dtype (bf16-native on v6e/v7x).
    val = buf[...] + pos_ref[...]

    if use_dropout:
        # Inverted dropout via integer-threshold compare on host-supplied bits.
        thresh = jnp.uint32(min(int(round(dropout_p * (2 ** 32))), 2 ** 32 - 1))
        keep = bits_ref[...] >= thresh
        scale = jnp.asarray(1.0 / (1.0 - dropout_p), dtype=val.dtype)
        val = jnp.where(keep, val * scale, jnp.zeros_like(val))

    out_ref[...] = val.astype(out_ref.dtype)


def embedding_stem(idx, tok_emb, pos_emb, *, dropout_p=0.1, training=False,
                   seed=0, max_tile=512, force_hbm_gather=False):
    """Pallas implementation of EmbeddingStem.forward.

    idx:     (B, T) integer token ids
    tok_emb: (vocab, E) embedding table (f32 or bf16)
    pos_emb: (1, block_size, E) or (block_size, E) positional embeddings
    returns: (B, T, E) in tok_emb.dtype
    """
    idx = idx.astype(jnp.int32)
    B, T = idx.shape
    vocab, E = tok_emb.shape

    if pos_emb.ndim == 3:
        assert pos_emb.shape[0] == 1, "pos_emb leading dim must be 1"
        pos_emb = pos_emb[0]
    assert pos_emb.ndim == 2 and pos_emb.shape[1] == E, "bad pos_emb shape"
    block_size = pos_emb.shape[0]
    assert T <= block_size, (
        f"Cannot forward sequence of length {T}, block size is only {block_size}")

    out_dtype = tok_emb.dtype
    # NOTE: keep E a multiple of 128 for unmasked lane-dense stores.
    tile_t = _pick_tile(T, max_tile, out_dtype)
    num_tiles = T // tile_t
    pos_sliced = pos_emb[:T]           # only the first T rows are ever used
    idx_flat = idx.reshape(-1)         # 1D scalar prefetch: no 2D SMEM padding

    use_dropout = bool(training) and float(dropout_p) > 0.0

    # --- VMEM budgeting & resident-table gate (per TPU generation) ----------
    tile_elems = tile_t * E
    working = (tile_elems * _itemsize(tok_emb.dtype)                # gather buf
               + 2 * tile_elems * _itemsize(out_dtype)              # out (dbl buf)
               + 2 * tile_elems * _itemsize(pos_emb.dtype)          # pos (dbl buf)
               + (2 * tile_elems * 4 if use_dropout else 0)         # bits (dbl buf)
               + (2 << 20))                                         # slack
    table_bytes = vocab * E * _itemsize(tok_emb.dtype)
    cap = _vmem_capacity_bytes()
    resident = (not force_hbm_gather) and (table_bytes + working <= int(0.75 * cap))

    vmem_need = working + (table_bytes if resident else 0) + (4 << 20)
    vmem_limit = int(min(max(vmem_need, 16 << 20), cap - (4 << 20), 112 << 20))

    # --- specs ----------------------------------------------------------------
    if resident:
        # Whole table lives in VMEM for the duration of the kernel (copied once,
        # single-buffered: no per-step DMA, no double-buffer blow-up).
        tok_spec = pl.BlockSpec(memory_space=pltpu.MemorySpace.VMEM)
    else:
        # Table stays in HBM; rows are gathered manually by DMA.
        tok_spec = pl.BlockSpec(memory_space=pl.ANY)

    in_specs = [
        tok_spec,
        # Positional rows for tile i: block index constant across the inner
        # batch axis, so each positional tile is DMA'd once per i (not per b).
        pl.BlockSpec((tile_t, E), lambda i, b, idx_ref: (i, 0)),
    ]
    args = [tok_emb, pos_sliced]

    if use_dropout:
        bits = jax.random.bits(jax.random.PRNGKey(int(seed)), (B, T, E),
                               dtype=jnp.uint32)
        in_specs.append(
            pl.BlockSpec((pl.Squeezed(), tile_t, E),
                         lambda i, b, idx_ref: (b, i, 0)))
        args.append(bits)

    out_spec = pl.BlockSpec((pl.Squeezed(), tile_t, E),
                            lambda i, b, idx_ref: (b, i, 0))

    scratch_shapes = [pltpu.VMEM((tile_t, E), tok_emb.dtype)]   # gather buffer
    if not resident:
        scratch_shapes.append(pltpu.SemaphoreType.DMA(()))      # one shared sem

    kernel = functools.partial(
        _stem_kernel, tile_t=tile_t, seq_len=T, dropout_p=float(dropout_p),
        use_dropout=use_dropout, resident=resident)

    grid_spec = pltpu.PrefetchScalarGridSpec(
        num_scalar_prefetch=1,
        grid=(num_tiles, B),
        in_specs=in_specs,
        out_specs=out_spec,
        scratch_shapes=scratch_shapes,
    )

    cost = pl.CostEstimate(
        flops=B * T * E,
        transcendentals=0,
        bytes_accessed=int(
            B * T * E * _itemsize(tok_emb.dtype)                 # gathered rows
            + T * E * _itemsize(pos_emb.dtype)                   # positional rows
            + B * T * 4                                          # token ids
            + (B * T * E * 4 if use_dropout else 0)              # dropout bits
            + B * T * E * _itemsize(out_dtype)))                 # output

    return pl.pallas_call(
        kernel,
        grid_spec=grid_spec,
        out_shape=jax.ShapeDtypeStruct((B, T, E), out_dtype),
        compiler_params=pltpu.CompilerParams(
            dimension_semantics=("parallel", "parallel"),
            vmem_limit_bytes=vmem_limit,
        ),
        cost_estimate=cost,
    )(idx_flat, *args)


if __name__ == "__main__":
    # Small, module-consistent shapes (E kept lane-dense at 128).
    vocab_size = 512
    n_embd = 128
    block_size = 16
    B, T = 2, 8

    key = jax.random.PRNGKey(0)
    k_idx, k_tok, k_pos = jax.random.split(key, 3)

    tok_emb = jax.random.normal(k_tok, (vocab_size, n_embd), dtype=jnp.float32)
    # PyTorch initializes pos_emb to zeros; small random values here so the
    # positional-add path is actually exercised by the check.
    pos_emb = 0.01 * jax.random.normal(k_pos, (1, block_size, n_embd),
                                       dtype=jnp.float32)
    idx = jax.random.randint(k_idx, (B, T), 0, vocab_size, dtype=jnp.int32)

    ref = tok_emb[idx] + pos_emb[0, :T][None, :, :]

    # Eval mode (dropout identity), VMEM-resident fast path.
    out = embedding_stem(idx, tok_emb, pos_emb, dropout_p=0.1, training=False)
    out = jax.block_until_ready(out)
    assert out.shape == (B, T, n_embd)
    assert jnp.allclose(out, ref, atol=1e-6), "resident path mismatch"

    # Eval mode, forced HBM-gather fallback path (large-table code path).
    out_hbm = embedding_stem(idx, tok_emb, pos_emb, dropout_p=0.1,
                             training=False, force_hbm_gather=True)
    out_hbm = jax.block_until_ready(out_hbm)
    assert jnp.allclose(out_hbm, ref, atol=1e-6), "HBM-gather path mismatch"

    # Training mode: dropout mask is reproducible from the seed -> exact check.
    # TODO(synk): PyTorch's dropout RNG stream cannot be reproduced bit-exactly;
    # this is an equivalent inverted dropout driven by jax.random bits.
    p, seed = 0.1, 1234
    out_tr = embedding_stem(idx, tok_emb, pos_emb, dropout_p=p, training=True,
                            seed=seed)
    out_tr = jax.block_until_ready(out_tr)
    bits = jax.random.bits(jax.random.PRNGKey(seed), (B, T, n_embd),
                           dtype=jnp.uint32)
    thresh = jnp.uint32(min(int(round(p * (2 ** 32))), 2 ** 32 - 1))
    keep = bits >= thresh
    ref_tr = jnp.where(keep, ref * jnp.float32(1.0 / (1.0 - p)), 0.0)
    assert jnp.allclose(out_tr, ref_tr, atol=1e-6), "training path mismatch"

    print("KERNEL_OK")
</pallas_src>

<mosaic_0001>
module attributes {stable_mosaic.version = 11 : i64} {
  func.func @_stem_kernel(%arg0: i32, %arg1: i32, %arg2: memref<16xi32, #tpu.memory_space<smem>>, %arg3: memref<512x128xf32, #tpu.memory_space<vmem>>, %arg4: memref<8x128xf32, #tpu.memory_space<vmem>>, %arg5: memref<1x8x128xf32, #tpu.memory_space<vmem>>, %arg6: memref<8x128xf32, #tpu.memory_space<vmem>>) attributes {dimension_semantics = [#tpu.dimension_semantics<parallel>, #tpu.dimension_semantics<parallel>], iteration_bounds = array<i64: 1, 2>, scalar_prefetch = 1 : i64, scratch_operands = 1 : i64, tpu.core_type = #tpu.core_type<tc>, window_params = [{pipeline_mode = #tpu.pipeline_mode<synchronous>, transform_indices = @transform_0, window_bounds = array<i64: 512, 128>}, {transform_indices = @transform_1, window_bounds = array<i64: 8, 128>}, {transform_indices = @transform_2, window_bounds = array<i64: 1, 8, 128>}]} {
    %c8_i32 = arith.constant 8 : i32
    %0 = arith.muli %arg1, %c8_i32 : i32
    %c8_i32_0 = arith.constant 8 : i32
    %1 = arith.muli %arg0, %c8_i32_0 : i32
    %2 = arith.addi %0, %1 : i32
    %c0_i32 = arith.constant 0 : i32
    %3 = arith.addi %2, %c0_i32 : i32
    %4 = arith.index_cast %3 : i32 to index
    %5 = memref.load %arg2[%4] : memref<16xi32, #tpu.memory_space<smem>>
    %6 = arith.index_cast %5 : i32 to index
    %c0 = arith.constant 0 : index
    %7 = vector.load %arg3[%6, %c0] : memref<512x128xf32, #tpu.memory_space<vmem>>, vector<1x128xf32>
    %8 = arith.index_cast %c0_i32 : i32 to index
    %c0_1 = arith.constant 0 : index
    %9 = vector.load %arg6[%8, %c0_1] : memref<8x128xf32, #tpu.memory_space<vmem>>, vector<1x128xf32>
    tpu.vector_store %arg6[%8, %c0_1], %7 {strides = array<i32>} : memref<8x128xf32, #tpu.memory_space<vmem>>, vector<1x128xf32>,
    %c1_i32 = arith.constant 1 : i32
    %10 = arith.addi %2, %c1_i32 : i32
    %11 = arith.index_cast %10 : i32 to index
    %12 = memref.load %arg2[%11] : memref<16xi32, #tpu.memory_space<smem>>
    %13 = arith.index_cast %12 : i32 to index
    %c0_2 = arith.constant 0 : index
    %14 = vector.load %arg3[%13, %c0_2] : memref<512x128xf32, #tpu.memory_space<vmem>>, vector<1x128xf32>
    %15 = arith.index_cast %c1_i32 : i32 to index
    %c0_3 = arith.constant 0 : index
    %16 = vector.load %arg6[%15, %c0_3] : memref<8x128xf32, #tpu.memory_space<vmem>>, vector<1x128xf32>
    tpu.vector_store %arg6[%15, %c0_3], %14 {strides = array<i32>} : memref<8x128xf32, #tpu.memory_space<vmem>>, vector<1x128xf32>,
    %c2_i32 = arith.constant 2 : i32
    %17 = arith.addi %2, %c2_i32 : i32
    %18 = arith.index_cast %17 : i32 to index
    %19 = memref.load %arg2[%18] : memref<16xi32, #tpu.memory_space<smem>>
    %20 = arith.index_cast %19 : i32 to index
    %c0_4 = arith.constant 0 : index
    %21 = vector.load %arg3[%20, %c0_4] : memref<512x128xf32, #tpu.memory_space<vmem>>, vector<1x128xf32>
    %22 = arith.index_cast %c2_i32 : i32 to index
    %c0_5 = arith.constant 0 : index
    %23 = vector.load %arg6[%22, %c0_5] : memref<8x128xf32, #tpu.memory_space<vmem>>, vector<1x128xf32>
    tpu.vector_store %arg6[%22, %c0_5], %21 {strides = array<i32>} : memref<8x128xf32, #tpu.memory_space<vmem>>, vector<1x128xf32>,
    %c3_i32 = arith.constant 3 : i32
    %24 = arith.addi %2, %c3_i32 : i32
    %25 = arith.index_cast %24 : i32 to index
    %26 = memref.load %arg2[%25] : memref<16xi32, #tpu.memory_space<smem>>
    %27 = arith.index_cast %26 : i32 to index
    %c0_6 = arith.constant 0 : index
    %28 = vector.load %arg3[%27, %c0_6] : memref<512x128xf32, #tpu.memory_space<vmem>>, vector<1x128xf32>
    %29 = arith.index_cast %c3_i32 : i32 to index
    %c0_7 = arith.constant 0 : index
    %30 = vector.load %arg6[%29, %c0_7] : memref<8x128xf32, #tpu.memory_space<vmem>>, vector<1x128xf32>
    tpu.vector_store %arg6[%29, %c0_7], %28 {strides = array<i32>} : memref<8x128xf32, #tpu.memory_space<vmem>>, vector<1x128xf32>,
    %c4_i32 = arith.constant 4 : i32
    %31 = arith.addi %2, %c4_i32 : i32
    %32 = arith.index_cast %31 : i32 to index
    %33 = memref.load %arg2[%32] : memref<16xi32, #tpu.memory_space<smem>>
    %34 = arith.index_cast %33 : i32 to index
    %c0_8 = arith.constant 0 : index
    %35 = vector.load %arg3[%34, %c0_8] : memref<512x128xf32, #tpu.memory_space<vmem>>, vector<1x128xf32>
    %36 = arith.index_cast %c4_i32 : i32 to index
    %c0_9 = arith.constant 0 : index
    %37 = vector.load %arg6[%36, %c0_9] : memref<8x128xf32, #tpu.memory_space<vmem>>, vector<1x128xf32>
    tpu.vector_store %arg6[%36, %c0_9], %35 {strides = array<i32>} : memref<8x128xf32, #tpu.memory_space<vmem>>, vector<1x128xf32>,
    %c5_i32 = arith.constant 5 : i32
    %38 = arith.addi %2, %c5_i32 : i32
    %39 = arith.index_cast %38 : i32 to index
    %40 = memref.load %arg2[%39] : memref<16xi32, #tpu.memory_space<smem>>
    %41 = arith.index_cast %40 : i32 to index
    %c0_10 = arith.constant 0 : index
    %42 = vector.load %arg3[%41, %c0_10] : memref<512x128xf32, #tpu.memory_space<vmem>>, vector<1x128xf32>
    %43 = arith.index_cast %c5_i32 : i32 to index
    %c0_11 = arith.constant 0 : index
    %44 = vector.load %arg6[%43, %c0_11] : memref<8x128xf32, #tpu.memory_space<vmem>>, vector<1x128xf32>
    tpu.vector_store %arg6[%43, %c0_11], %42 {strides = array<i32>} : memref<8x128xf32, #tpu.memory_space<vmem>>, vector<1x128xf32>,
    %c6_i32 = arith.constant 6 : i32
    %45 = arith.addi %2, %c6_i32 : i32
    %46 = arith.index_cast %45 : i32 to index
    %47 = memref.load %arg2[%46] : memref<16xi32, #tpu.memory_space<smem>>
    %48 = arith.index_cast %47 : i32 to index
    %c0_12 = arith.constant 0 : index
    %49 = vector.load %arg3[%48, %c0_12] : memref<512x128xf32, #tpu.memory_space<vmem>>, vector<1x128xf32>
    %50 = arith.index_cast %c6_i32 : i32 to index
    %c0_13 = arith.constant 0 : index
    %51 = vector.load %arg6[%50, %c0_13] : memref<8x128xf32, #tpu.memory_space<vmem>>, vector<1x128xf32>
    tpu.vector_store %arg6[%50, %c0_13], %49 {strides = array<i32>} : memref<8x128xf32, #tpu.memory_space<vmem>>, vector<1x128xf32>,
    %c7_i32 = arith.constant 7 : i32
    %52 = arith.addi %2, %c7_i32 : i32
    %53 = arith.index_cast %52 : i32 to index
    %54 = memref.load %arg2[%53] : memref<16xi32, #tpu.memory_space<smem>>
    %55 = arith.index_cast %54 : i32 to index
    %c0_14 = arith.constant 0 : index
    %56 = vector.load %arg3[%55, %c0_14] : memref<512x128xf32, #tpu.memory_space<vmem>>, vector<1x128xf32>
    %57 = arith.index_cast %c7_i32 : i32 to index
    %c0_15 = arith.constant 0 : index
    %58 = vector.load %arg6[%57, %c0_15] : memref<8x128xf32, #tpu.memory_space<vmem>>, vector<1x128xf32>
    tpu.vector_store %arg6[%57, %c0_15], %56 {strides = array<i32>} : memref<8x128xf32, #tpu.memory_space<vmem>>, vector<1x128xf32>,
    %c8_i32_16 = arith.constant 8 : i32
    %c0_17 = arith.constant 0 : index
    %c0_18 = arith.constant 0 : index
    %59 = vector.load %arg6[%c0_17, %c0_18] : memref<8x128xf32, #tpu.memory_space<vmem>>, vector<8x128xf32>
    %c0_19 = arith.constant 0 : index
    %c0_20 = arith.constant 0 : index
    %60 = vector.load %arg4[%c0_19, %c0_20] : memref<8x128xf32, #tpu.memory_space<vmem>>, vector<8x128xf32>
    %61 = arith.addf %59, %60 : vector<8x128xf32>
    %c0_21 = arith.constant 0 : index
    %c0_22 = arith.constant 0 : index
    %c0_23 = arith.constant 0 : index
    %62 = vector.load %arg5[%c0_21, %c0_22, %c0_23] : memref<1x8x128xf32, #tpu.memory_space<vmem>>, vector<1x8x128xf32>
    %63 = vector.shape_cast %62 : vector<1x8x128xf32> to vector<8x128xf32>
    %64 = vector.shape_cast %61 : vector<8x128xf32> to vector<1x8x128xf32>
    tpu.vector_store %arg5[%c0_21, %c0_22, %c0_23], %64 {strides = array<i32>} : memref<1x8x128xf32, #tpu.memory_space<vmem>>, vector<1x8x128xf32>,
    return
  }
  func.func @transform_0(%arg0: i32, %arg1: i32, %arg2: memref<16xi32, #tpu.memory_space<smem>>) -> (i32, i32) {
    %c0_i32 = arith.constant 0 : i32
    %c0_i32_0 = arith.constant 0 : i32
    %c0_i32_1 = arith.constant 0 : i32
    return %c0_i32, %c0_i32_0 : i32, i32
  }
  func.func @transform_1(%arg0: i32, %arg1: i32, %arg2: memref<16xi32, #tpu.memory_space<smem>>) -> (i32, i32) {
    %c0_i32 = arith.constant 0 : i32
    %c0_i32_0 = arith.constant 0 : i32
    return %arg0, %c0_i32 : i32, i32
  }
  func.func @transform_2(%arg0: i32, %arg1: i32, %arg2: memref<16xi32, #tpu.memory_space<smem>>) -> (i32, i32, i32) {
    %c0_i32 = arith.constant 0 : i32
    %c0_i32_0 = arith.constant 0 : i32
    return %arg1, %arg0, %c0_i32 : i32, i32, i32
  }
}

</mosaic_0001>

<bundles_post_ra>
// kernel: tpu_custom_call.1
= control target key start
LH: loop header
LB: loop body
LE: loop exit
PB: predicated region body
PF: predicated region fallthrough
CT: control target
= control target key end

     0   :  { %s590_s15 = smov [#allocation4]   ;;  %s749_s0 = inlined_call_operand.hbm [shape: s32[16], index: 0, kind: input, shape index: {}]   ;;  %s750_s1 = inlined_call_operand.hbm [shape: f32[512,128], index: 1, kind: input, shape index: {}]   ;;  %s751_s2 = inlined_call_operand.hbm [shape: f32[8,128], index: 2, kind: input, shape index: {}]   ;;  %s752_s3 = inlined_call_operand.hbm [shape: f32[2,8,128], index: 3, kind: output, shape index: {}]  }
   0x1   :  { %s9_s14 = sshll.u32 %s749_s0, 4  ;;  %s10_s14 = int_to_ptr.hbm [resolvable:$true] %s9_s14 }
   0x2   :  { %12 = dma.hbm_to_smem %s10_s14, 16, %s590_s15, [#allocation3] }
   0x3   :  { %552 = dma.done.wait [#allocation3], 16 }
   0x4   :  { %553 = vsyncadd [#allocation3], 4294967280 }
   0x5   :  { %15 = sfence }
   0x6   :  { %16 = vsyncpa [#allocation6], 0 }
   0x7   :  { %17 = vsyncpa [#allocation9], 0 }
   0x8   :  { %18 = vsyncpa [#allocation7], 0 }
   0x9   :  { %20 = vsyncpa [#allocation7 + $0x1], 0  ;;  %s618_s16 = smov 0   ;;  %s620_s17 = smov 0  }
   0xa   :  { %s622_s18 = smov 0   ;;  %s624_s19 = smov 0  }
   0xb   :  { %s626_s20 = smov 0   ;;  %s628_s0 = smov 0  }
   0xc LB: > { %s335_s21 = sadd.s32 4294967295, %s588_s0   ;;  %s336_s22 = sadd.s32 4294967294, %s588_s0   ;;  %s588_s0 = sphi %s628_s0, %s26_s0   ;;  %s584_s20 = sphi %s626_s20, %s761_s20   ;;  %s580_s19 = sphi %s624_s19, %s760_s19   ;;  %s576_s18 = sphi %s622_s18, %s759_s18   ;;  %s572_s17 = sphi %s620_s17, %s758_s17   ;;  %s568_s16 = sphi %s618_s16, %s757_s16  }
   0xd   : > { %s35_s23 = sadd.s32 1, %s584_s20  ;;  %s94_s24 = sadd.s32 1, %s576_s18 }
   0xe   : > { %p36_p0 = scmp.ge.s32.totalorder %s35_s23, 2  ;;  %p104_p1 = scmp.ne.s32.totalorder %s576_s18, %s572_s17 }
   0xf   : > { %p105_p2 = scmp.eq.s32.totalorder %s335_s21, 1  ;;  %p110_p3 = scmp.ne.s32.totalorder %s572_s17, %s568_s16 }
  0x10   : > { %s763_s23 = smov (%p36_p0, %s35_s23), 0  ;;  %p111_p5 = scmp.eq.s32.totalorder %s336_s22, 1 }
  0x11   : > { %p658_p4 = por %p105_p2, %p104_p1  ;;  %s89_s26 = ssub.s32 %s584_s20, %s763_s23 }
  0x12   : > { %p337_p6 = scmp.ge.s32.totalorder %s588_s0, 1  ;;  %p92_p7 = scmp.eq.s32.totalorder %s89_s26, 0 }
  0x13   : > { %p665_p8 = por %p111_p5, %p110_p3  ;;  %p118_p9 = scmp.lt.s32.totalorder %s588_s0, 3 }
  0x14   : > { %s671_s28 = scalar_select %p92_p7, %s576_s18, %s94_s24  }
  0x15   : > { %p673_p10 = pnand %p337_p6, %p118_p9  ;;  %p677_p11 = scmp.eq.s32.totalorder %s335_s21, 0 }
  0x16   : > { %s129_s6 = sshll.u32 %s750_s1, 4  ;;  %s591_s7 = smov [#allocation5]   ;;  %s130_s6 = int_to_ptr.hbm [resolvable:$true] %s129_s6 }
  0x17   : > { %p359_p12 = pneg %p673_p10  ;;  %s131_s8 = sshll.u32 %s591_s7, 4  ;;  %s132_s8 = int_to_ptr.vmem [resolvable:$true] %s131_s8 }
  0x18   : > { %s146_s11 = sshll.u32 %s751_s2, 4  ;;  %s592_s12 = smov 128   ;;  %s147_s11 = int_to_ptr.hbm [resolvable:$true] %s146_s11 }
  0x19   : > { %p360_p13 = pnand %p677_p11, %p359_p12  ;;  %s593_s13 = smov 8  }
  0x1a   : > { %s594_s14 = smov [#allocation8]   ;;  %161 = sbr.rel (%p673_p10) target bundleno = 64 (0x40), region = 28 }
  0x1b   : > { %362 = dma.hbm_to_vmem [thread:$0]  (!%p360_p13), %s130_s6, 8192, %s132_s8, [#allocation6], %s592_s12, %s592_s12, %s593_s13  }
  0x1c   : > { %s148_s15 = sshll.u32 %s594_s14, 4  ;;  %s149_s15 = int_to_ptr.vmem [resolvable:$true] %s148_s15 }
  0x1d   : > { %365 = dma.hbm_to_vmem [thread:$0]  (!%p360_p13), %s147_s11, 128, %s149_s15, [#allocation9]  }
  0x1f   : > { %555 = dma.done.wait (%p677_p11), [#allocation6], 8192  }
  0x20   : > { %557 = vsyncadd (%p677_p11), [#allocation6], 4294959104 }
  0x21   : > { %559 = dma.done.wait (%p677_p11), [#allocation9], 128  }
  0x22   : > { %561 = vsyncadd (%p677_p11), [#allocation9], 4294967168  ;;  %s702_s21 = sshll.u32 %s580_s19, 3  ;;  %v227_v8 = vld [vmem:[#allocation8] sm:$0xff] }
  0x23   : > { %s187_s22 = sld [smem:[#allocation4 + %s702_s21]]  ;;  %s191_s24 = sadd.s32 1, %s702_s21 }
  0x24   : > { %s192_s26 = sld [smem:[#allocation4 + %s191_s24]]  ;;  %s196_s29 = sadd.s32 2, %s702_s21 }
  0x25   : > { %s197_s4 = sld [smem:[#allocation4 + %s196_s29]]  ;;  %s201_s5 = sadd.s32 3, %s702_s21 }
  0x26   : > { %s202_s6 = sld [smem:[#allocation4 + %s201_s5]]  ;;  %s206_s30 = sadd.s32 4, %s702_s21 }
  0x27   : > { %s207_s7 = sld [smem:[#allocation4 + %s206_s30]]  ;;  %s211_s8 = sadd.s32 5, %s702_s21 }
  0x28   : > { %s212_s19 = sld [smem:[#allocation4 + %s211_s8]]  ;;  %s216_s9 = sadd.s32 6, %s702_s21 }
  0x29   : > { %s217_s10 = sld [smem:[#allocation4 + %s216_s9]]  ;;  %s188_s11 = scalar_lea.vmem [#allocation5], %s187_s22 }
  0x2a   : > { %v189_v0 = vld [vmem:[%s188_s11] sm:$0x1]  ;;  %s221_s12 = sadd.s32 7, %s702_s21  ;;  %s193_s13 = scalar_lea.vmem [#allocation5], %s192_s26 }
  0x2b   : > { %190 = vst [vmem:[#allocation2] sm:$0x1] %v189_v0  ;;  %v194_v1 = vld [vmem:[%s193_s13] sm:$0x1]  ;;  %s222_s14 = sld [smem:[#allocation4 + %s221_s12]]  ;;  %s198_s15 = scalar_lea.vmem [#allocation5], %s197_s4 }
  0x2c   : > { %195 = vst [vmem:[#allocation2 + $0x1] sm:$0x1] %v194_v1  ;;  %v199_v2 = vld [vmem:[%s198_s15] sm:$0x1]  ;;  %s203_s24 = scalar_lea.vmem [#allocation5], %s202_s6  ;;  %s181_s22 = sand.u32 1, %s572_s17  }
  0x2d   : > { %200 = vst [vmem:[#allocation2 + $0x2] sm:$0x1] %v199_v2  ;;  %v204_v3 = vld [vmem:[%s203_s24] sm:$0x1]  ;;  %s208_s29 = scalar_lea.vmem [#allocation5], %s207_s7  ;;  %s343_s8 = sshll.u32 %s181_s22, 3 }
  0x2e   : > { %205 = vst [vmem:[#allocation2 + $0x3] sm:$0x1] %v204_v3  ;;  %v209_v4 = vld [vmem:[%s208_s29] sm:$0x1]  ;;  %s213_s5 = scalar_lea.vmem [#allocation5], %s212_s19  ;;  %s242_s6 = scalar_lea.hbm %s752_s3, %s702_s21 }
  0x2f   : > { %210 = vst [vmem:[#allocation2 + $0x4] sm:$0x1] %v209_v4  ;;  %v214_v5 = vld [vmem:[%s213_s5] sm:$0x1]  ;;  %s218_s30 = scalar_lea.vmem [#allocation5], %s217_s10  ;;  %s183_s7 = scalar_lea.vmem [#allocation10], %s343_s8 }
  0x30   : > { %215 = vst [vmem:[#allocation2 + $0x5] sm:$0x1] %v214_v5  ;;  %v219_v6 = vld [vmem:[%s218_s30] sm:$0x1]  ;;  %s244_s11 = sshll.u32 %s183_s7, 4  ;;  %s246_s12 = sshll.u32 %s242_s6, 4  ;;  %s245_s11 = int_to_ptr.vmem [resolvable:$true] %s244_s11  ;;  %s247_s12 = int_to_ptr.hbm [resolvable:$true] %s246_s12 }
  0x31   : > { %220 = vst [vmem:[#allocation2 + $0x6] sm:$0x1] %v219_v6  ;;  %s223_s26 = scalar_lea.vmem [#allocation5], %s222_s14  ;;  %s231_s19 = scalar_lea.sflag [#allocation7], %s181_s22 }
  0x32   : > { %v224_v7 = vld [vmem:[%s223_s26] sm:$0x1]  ;;  %s514_s10 = sshra.s32 %s247_s12, 4  ;;  %s520_s21 = scalar_lea.hbm %s752_s3, 16  ;;  %s515_s10 = int_to_ptr.hbm [resolvable:$true] %s514_s10 }
  0x33   : > { %225 = vst [vmem:[#allocation2 + $0x7] sm:$0x1] %v224_v7  ;;  %s516_s13 = scalar_lea.hbm %s515_s10, 8  ;;  %p521_p3 = scmp.lt.s32.totalorder %s515_s10, %s752_s3 }
  0x34   : > { %p517_p0 = scmp.ne.s32.totalorder %s515_s10, %s516_s13  ;;  %p522_p5 = scmp.lt.s32.totalorder %s520_s21, %s516_s13 }
  0x36   : > { %p518_p1 = pnand %p517_p0, %p658_p4  ;;  %p523_p6 = por %p522_p5, %p521_p3 }
  0x38   : > { %p519_p2 = pneg %p518_p1 }
  0x3a   : > { %v226_v9 = vld [vmem:[#allocation2] sm:$0xff]  ;;  %p524_p7 = pnand %p523_p6, %p519_p2 }
  0x3b   : > { %v228_v10 = vadd.f32 %v227_v8, %v226_v9 }
  0x3d   : > { %229 = vst [vmem:[%s183_s7] sm:$0xff] %v228_v10 }
  0x3e   : > { %527 = shalt.err (!%p524_p7)
}
  0x3f   : > { %357 = dma.vmem_to_hbm [thread:$0]  (%p658_p4), %s245_s11, 128, %s247_s12, %s231_s19  }
  0x40 PF: > { %p374_p9 = scmp.ge.s32.totalorder %s588_s0, 2  ;;  %s258_s5 = sand.u32 1, %s568_s16  }
  0x41   : > { %s259_s22 = scalar_lea.sflag [#allocation7], %s258_s5 }
  0x42   : > { %p367_p10 = pnand %p374_p9, %p665_p8 }
  0x44   : > { %p368_p11 = pneg %p367_p10 }
  0x46   : > { %563 = dma.done.wait (%p368_p11), %s259_s22, 128  }
  0x47   : > { %565 = vsyncadd (%p368_p11), %s259_s22, 4294967168  ;;  %s26_s0 = sadd.s32 1, %s588_s0   ;;  %s757_s16 = smov %s572_s17 }
  0x48   : > { %p23_p12 = scmp.ge.s32.totalorder %s26_s0, 4   ;;  %s758_s17 = smov %s576_s18 }
  0x49   : > { %s759_s18 = smov %s671_s28  ;;  %s760_s19 = smov %s584_s20 }
  0x4a   : > { %s761_s20 = smov %s763_s23  ;;  %25 = sbr.rel (!%p23_p12) target bundleno = 12 (0xc), region = 78 }
  0x4f   :  { %265 = vsyncpa [#allocation6], 1 }
  0x50   :  { %267 = vsyncpa [#allocation6 + $0x1], 1 }
  0x51   :  { %268 = vsyncpa [#allocation9], 1 }
  0x52   :  { %269 = vsyncpa [#allocation7], 1 }
  0x53   :  { %271 = vsyncpa [#allocation7 + $0x1], 1 }

</bundles_post_ra>
